<compile_context>
chip_gen: v7x
topology: tpu7x:2x2x1
jax: 0.10.0
libtpu: 0.0.40
codegen_flags: <defaults>
</compile_context>

<pallas_src>
import jax
import jax.numpy as jnp
from jax.experimental import pallas as pl
from jax.experimental.pallas import tpu as pltpu

HIDDEN = 8
OUT = 3
# Packed parameter layout (flat f32 vector, lives in SMEM inside the kernel):
#   [0:8)    w1  : Linear(1, 8) weight, one scalar per hidden unit
#   [8:16)   b1  : Linear(1, 8) bias
#   [16:40)  w2  : Linear(8, 3) weight, row-major (in=k, out=j) -> 16 + 3*k + j
#   [40:43)  b2  : Linear(8, 3) bias
N_PARAMS = HIDDEN + HIDDEN + HIDDEN * OUT + OUT  # 43


def _mlp_kernel(params_ref, x_ref, o_ref):
    """Lane-dense MLP tile: x_ref (1, TB) f32 -> o_ref (3, TB) f32 logits."""
    x = x_ref[...]                                          # (1, TB)
    acc = [None, None, None]
    # Fully unrolled at trace time: 8 hidden units x 3 outputs = 24 VPU FMAs/vreg.
    for k in range(HIDDEN):
        w1_k = params_ref[k]                                # SMEM scalar
        b1_k = params_ref[HIDDEN + k]
        h_k = jnp.maximum(x * w1_k + b1_k, 0.0)             # (1, TB) ReLU
        for j in range(OUT):
            w2_kj = params_ref[2 * HIDDEN + OUT * k + j]
            term = h_k * w2_kj
            acc[j] = term if acc[j] is None else acc[j] + term
    rows = [acc[j] + params_ref[2 * HIDDEN + OUT * HIDDEN + j] for j in range(OUT)]
    o_ref[...] = jnp.concatenate(rows, axis=0).astype(o_ref.dtype)  # (3, TB)


def risk_classifier_forward(x, w1, b1, w2, b2, *, tile=512):
    """x: (B, 1) float32 -> (B, 3) float32 logits.

    Weights use the (in, out) convention (transposed vs. PyTorch nn.Linear).
    """
    B = x.shape[0]

    # Pack all 43 parameters into one flat f32 vector (single tiny SMEM input).
    params = jnp.concatenate(
        [w1.reshape(-1), b1.reshape(-1), w2.reshape(-1), b2.reshape(-1)]
    ).astype(jnp.float32)                                   # (43,)

    # Lane-dense layout: batch on the last axis, zero-padded to a tile multiple.
    n_tiles = pl.cdiv(B, tile)
    b_pad = n_tiles * tile
    xt = jnp.zeros((1, b_pad), jnp.float32).at[0, :B].set(
        x.reshape(-1).astype(jnp.float32))

    cost = pl.CostEstimate(
        flops=64 * b_pad,
        transcendentals=0,
        bytes_accessed=16 * b_pad + 4 * N_PARAMS,
    )

    out = pl.pallas_call(
        _mlp_kernel,
        out_shape=jax.ShapeDtypeStruct((OUT, b_pad), jnp.float32),
        grid_spec=pl.GridSpec(
            grid=(n_tiles,),
            in_specs=[
                # Packed params: whole array, resident in SMEM (scalar reads).
                pl.BlockSpec(memory_space=pltpu.MemorySpace.SMEM),
                # x tile: (1, tile) lane-dense block per grid step.
                pl.BlockSpec((1, tile), lambda i: (0, i)),
            ],
            out_specs=pl.BlockSpec((OUT, tile), lambda i: (0, i)),
        ),
        compiler_params=pltpu.CompilerParams(
            dimension_semantics=("parallel",),  # shard batch tiles across TCs (v7x)
        ),
        cost_estimate=cost,
    )(params, xt)

    # Back to the PyTorch (B, 3) view; drop padding lanes.
    return out[:, :B].T


def init_params(key):
    """Deterministic init mimicking nn.Linear's uniform(-1/sqrt(fan_in), 1/sqrt(fan_in))."""
    k1, k2, k3, k4 = jax.random.split(key, 4)
    # Linear(1, 8): fan_in = 1
    bound1 = 1.0
    w1 = jax.random.uniform(k1, (1, 8), jnp.float32, -bound1, bound1)   # (in, out)
    b1 = jax.random.uniform(k2, (1, 8), jnp.float32, -bound1, bound1)
    # Linear(8, 3): fan_in = 8
    bound2 = 1.0 / jnp.sqrt(8.0)
    w2 = jax.random.uniform(k3, (8, 3), jnp.float32, -bound2, bound2)   # (in, out)
    b2 = jax.random.uniform(k4, (1, 3), jnp.float32, -bound2, bound2)
    return w1, b1, w2, b2


if __name__ == "__main__":
    key = jax.random.PRNGKey(0)
    kx, kp = jax.random.split(key)

    B = 8
    x = jax.random.normal(kx, (B, 1), jnp.float32)
    w1, b1, w2, b2 = init_params(kp)

    out = jax.block_until_ready(risk_classifier_forward(x, w1, b1, w2, b2))

    # Pure-JAX reference of the same forward pass.
    ref = jnp.maximum(x @ w1 + b1, 0.0) @ w2 + b2
    assert out.shape == (B, 3)
    assert jnp.allclose(out, ref, atol=1e-5), "mismatch vs reference"

    print("KERNEL_OK")
</pallas_src>

<mosaic_0001>
module attributes {stable_mosaic.version = 11 : i64} {
  func.func @_mlp_kernel(%arg0: i32, %arg1: memref<43xf32, #tpu.memory_space<smem>>, %arg2: memref<1x512xf32, #tpu.memory_space<vmem>>, %arg3: memref<3x512xf32, #tpu.memory_space<vmem>>) attributes {dimension_semantics = [#tpu.dimension_semantics<parallel>], iteration_bounds = array<i64: 1>, scalar_prefetch = 0 : i64, scratch_operands = 0 : i64, tpu.core_type = #tpu.core_type<tc>, window_params = [{transform_indices = @transform_0, window_bounds = array<i64: 43>}, {transform_indices = @transform_1, window_bounds = array<i64: 1, 512>}, {transform_indices = @transform_2, window_bounds = array<i64: 3, 512>}]} {
    %c0 = arith.constant 0 : index
    %c0_0 = arith.constant 0 : index
    %0 = vector.load %arg2[%c0, %c0_0] : memref<1x512xf32, #tpu.memory_space<vmem>>, vector<1x512xf32>
    %c0_1 = arith.constant 0 : index
    %1 = memref.load %arg1[%c0_1] : memref<43xf32, #tpu.memory_space<smem>>
    %c8 = arith.constant 8 : index
    %2 = memref.load %arg1[%c8] : memref<43xf32, #tpu.memory_space<smem>>
    %3 = vector.broadcast %1 : f32 to vector<1x512xf32>
    %4 = arith.mulf %0, %3 : vector<1x512xf32>
    %5 = vector.broadcast %2 : f32 to vector<1x512xf32>
    %6 = arith.addf %4, %5 : vector<1x512xf32>
    %cst = arith.constant 0.000000e+00 : f32
    %7 = vector.broadcast %cst : f32 to vector<1x512xf32>
    %8 = arith.maximumf %6, %7 : vector<1x512xf32>
    %c16 = arith.constant 16 : index
    %9 = memref.load %arg1[%c16] : memref<43xf32, #tpu.memory_space<smem>>
    %10 = vector.broadcast %9 : f32 to vector<1x512xf32>
    %11 = arith.mulf %8, %10 : vector<1x512xf32>
    %c17 = arith.constant 17 : index
    %12 = memref.load %arg1[%c17] : memref<43xf32, #tpu.memory_space<smem>>
    %13 = vector.broadcast %12 : f32 to vector<1x512xf32>
    %14 = arith.mulf %8, %13 : vector<1x512xf32>
    %c18 = arith.constant 18 : index
    %15 = memref.load %arg1[%c18] : memref<43xf32, #tpu.memory_space<smem>>
    %16 = vector.broadcast %15 : f32 to vector<1x512xf32>
    %17 = arith.mulf %8, %16 : vector<1x512xf32>
    %c1 = arith.constant 1 : index
    %18 = memref.load %arg1[%c1] : memref<43xf32, #tpu.memory_space<smem>>
    %c9 = arith.constant 9 : index
    %19 = memref.load %arg1[%c9] : memref<43xf32, #tpu.memory_space<smem>>
    %20 = vector.broadcast %18 : f32 to vector<1x512xf32>
    %21 = arith.mulf %0, %20 : vector<1x512xf32>
    %22 = vector.broadcast %19 : f32 to vector<1x512xf32>
    %23 = arith.addf %21, %22 : vector<1x512xf32>
    %cst_2 = arith.constant 0.000000e+00 : f32
    %24 = vector.broadcast %cst_2 : f32 to vector<1x512xf32>
    %25 = arith.maximumf %23, %24 : vector<1x512xf32>
    %c19 = arith.constant 19 : index
    %26 = memref.load %arg1[%c19] : memref<43xf32, #tpu.memory_space<smem>>
    %27 = vector.broadcast %26 : f32 to vector<1x512xf32>
    %28 = arith.mulf %25, %27 : vector<1x512xf32>
    %29 = arith.addf %11, %28 : vector<1x512xf32>
    %c20 = arith.constant 20 : index
    %30 = memref.load %arg1[%c20] : memref<43xf32, #tpu.memory_space<smem>>
    %31 = vector.broadcast %30 : f32 to vector<1x512xf32>
    %32 = arith.mulf %25, %31 : vector<1x512xf32>
    %33 = arith.addf %14, %32 : vector<1x512xf32>
    %c21 = arith.constant 21 : index
    %34 = memref.load %arg1[%c21] : memref<43xf32, #tpu.memory_space<smem>>
    %35 = vector.broadcast %34 : f32 to vector<1x512xf32>
    %36 = arith.mulf %25, %35 : vector<1x512xf32>
    %37 = arith.addf %17, %36 : vector<1x512xf32>
    %c2 = arith.constant 2 : index
    %38 = memref.load %arg1[%c2] : memref<43xf32, #tpu.memory_space<smem>>
    %c10 = arith.constant 10 : index
    %39 = memref.load %arg1[%c10] : memref<43xf32, #tpu.memory_space<smem>>
    %40 = vector.broadcast %38 : f32 to vector<1x512xf32>
    %41 = arith.mulf %0, %40 : vector<1x512xf32>
    %42 = vector.broadcast %39 : f32 to vector<1x512xf32>
    %43 = arith.addf %41, %42 : vector<1x512xf32>
    %cst_3 = arith.constant 0.000000e+00 : f32
    %44 = vector.broadcast %cst_3 : f32 to vector<1x512xf32>
    %45 = arith.maximumf %43, %44 : vector<1x512xf32>
    %c22 = arith.constant 22 : index
    %46 = memref.load %arg1[%c22] : memref<43xf32, #tpu.memory_space<smem>>
    %47 = vector.broadcast %46 : f32 to vector<1x512xf32>
    %48 = arith.mulf %45, %47 : vector<1x512xf32>
    %49 = arith.addf %29, %48 : vector<1x512xf32>
    %c23 = arith.constant 23 : index
    %50 = memref.load %arg1[%c23] : memref<43xf32, #tpu.memory_space<smem>>
    %51 = vector.broadcast %50 : f32 to vector<1x512xf32>
    %52 = arith.mulf %45, %51 : vector<1x512xf32>
    %53 = arith.addf %33, %52 : vector<1x512xf32>
    %c24 = arith.constant 24 : index
    %54 = memref.load %arg1[%c24] : memref<43xf32, #tpu.memory_space<smem>>
    %55 = vector.broadcast %54 : f32 to vector<1x512xf32>
    %56 = arith.mulf %45, %55 : vector<1x512xf32>
    %57 = arith.addf %37, %56 : vector<1x512xf32>
    %c3 = arith.constant 3 : index
    %58 = memref.load %arg1[%c3] : memref<43xf32, #tpu.memory_space<smem>>
    %c11 = arith.constant 11 : index
    %59 = memref.load %arg1[%c11] : memref<43xf32, #tpu.memory_space<smem>>
    %60 = vector.broadcast %58 : f32 to vector<1x512xf32>
    %61 = arith.mulf %0, %60 : vector<1x512xf32>
    %62 = vector.broadcast %59 : f32 to vector<1x512xf32>
    %63 = arith.addf %61, %62 : vector<1x512xf32>
    %cst_4 = arith.constant 0.000000e+00 : f32
    %64 = vector.broadcast %cst_4 : f32 to vector<1x512xf32>
    %65 = arith.maximumf %63, %64 : vector<1x512xf32>
    %c25 = arith.constant 25 : index
    %66 = memref.load %arg1[%c25] : memref<43xf32, #tpu.memory_space<smem>>
    %67 = vector.broadcast %66 : f32 to vector<1x512xf32>
    %68 = arith.mulf %65, %67 : vector<1x512xf32>
    %69 = arith.addf %49, %68 : vector<1x512xf32>
    %c26 = arith.constant 26 : index
    %70 = memref.load %arg1[%c26] : memref<43xf32, #tpu.memory_space<smem>>
    %71 = vector.broadcast %70 : f32 to vector<1x512xf32>
    %72 = arith.mulf %65, %71 : vector<1x512xf32>
    %73 = arith.addf %53, %72 : vector<1x512xf32>
    %c27 = arith.constant 27 : index
    %74 = memref.load %arg1[%c27] : memref<43xf32, #tpu.memory_space<smem>>
    %75 = vector.broadcast %74 : f32 to vector<1x512xf32>
    %76 = arith.mulf %65, %75 : vector<1x512xf32>
    %77 = arith.addf %57, %76 : vector<1x512xf32>
    %c4 = arith.constant 4 : index
    %78 = memref.load %arg1[%c4] : memref<43xf32, #tpu.memory_space<smem>>
    %c12 = arith.constant 12 : index
    %79 = memref.load %arg1[%c12] : memref<43xf32, #tpu.memory_space<smem>>
    %80 = vector.broadcast %78 : f32 to vector<1x512xf32>
    %81 = arith.mulf %0, %80 : vector<1x512xf32>
    %82 = vector.broadcast %79 : f32 to vector<1x512xf32>
    %83 = arith.addf %81, %82 : vector<1x512xf32>
    %cst_5 = arith.constant 0.000000e+00 : f32
    %84 = vector.broadcast %cst_5 : f32 to vector<1x512xf32>
    %85 = arith.maximumf %83, %84 : vector<1x512xf32>
    %c28 = arith.constant 28 : index
    %86 = memref.load %arg1[%c28] : memref<43xf32, #tpu.memory_space<smem>>
    %87 = vector.broadcast %86 : f32 to vector<1x512xf32>
    %88 = arith.mulf %85, %87 : vector<1x512xf32>
    %89 = arith.addf %69, %88 : vector<1x512xf32>
    %c29 = arith.constant 29 : index
    %90 = memref.load %arg1[%c29] : memref<43xf32, #tpu.memory_space<smem>>
    %91 = vector.broadcast %90 : f32 to vector<1x512xf32>
    %92 = arith.mulf %85, %91 : vector<1x512xf32>
    %93 = arith.addf %73, %92 : vector<1x512xf32>
    %c30 = arith.constant 30 : index
    %94 = memref.load %arg1[%c30] : memref<43xf32, #tpu.memory_space<smem>>
    %95 = vector.broadcast %94 : f32 to vector<1x512xf32>
    %96 = arith.mulf %85, %95 : vector<1x512xf32>
    %97 = arith.addf %77, %96 : vector<1x512xf32>
    %c5 = arith.constant 5 : index
    %98 = memref.load %arg1[%c5] : memref<43xf32, #tpu.memory_space<smem>>
    %c13 = arith.constant 13 : index
    %99 = memref.load %arg1[%c13] : memref<43xf32, #tpu.memory_space<smem>>
    %100 = vector.broadcast %98 : f32 to vector<1x512xf32>
    %101 = arith.mulf %0, %100 : vector<1x512xf32>
    %102 = vector.broadcast %99 : f32 to vector<1x512xf32>
    %103 = arith.addf %101, %102 : vector<1x512xf32>
    %cst_6 = arith.constant 0.000000e+00 : f32
    %104 = vector.broadcast %cst_6 : f32 to vector<1x512xf32>
    %105 = arith.maximumf %103, %104 : vector<1x512xf32>
    %c31 = arith.constant 31 : index
    %106 = memref.load %arg1[%c31] : memref<43xf32, #tpu.memory_space<smem>>
    %107 = vector.broadcast %106 : f32 to vector<1x512xf32>
    %108 = arith.mulf %105, %107 : vector<1x512xf32>
    %109 = arith.addf %89, %108 : vector<1x512xf32>
    %c32 = arith.constant 32 : index
    %110 = memref.load %arg1[%c32] : memref<43xf32, #tpu.memory_space<smem>>
    %111 = vector.broadcast %110 : f32 to vector<1x512xf32>
    %112 = arith.mulf %105, %111 : vector<1x512xf32>
    %113 = arith.addf %93, %112 : vector<1x512xf32>
    %c33 = arith.constant 33 : index
    %114 = memref.load %arg1[%c33] : memref<43xf32, #tpu.memory_space<smem>>
    %115 = vector.broadcast %114 : f32 to vector<1x512xf32>
    %116 = arith.mulf %105, %115 : vector<1x512xf32>
    %117 = arith.addf %97, %116 : vector<1x512xf32>
    %c6 = arith.constant 6 : index
    %118 = memref.load %arg1[%c6] : memref<43xf32, #tpu.memory_space<smem>>
    %c14 = arith.constant 14 : index
    %119 = memref.load %arg1[%c14] : memref<43xf32, #tpu.memory_space<smem>>
    %120 = vector.broadcast %118 : f32 to vector<1x512xf32>
    %121 = arith.mulf %0, %120 : vector<1x512xf32>
    %122 = vector.broadcast %119 : f32 to vector<1x512xf32>
    %123 = arith.addf %121, %122 : vector<1x512xf32>
    %cst_7 = arith.constant 0.000000e+00 : f32
    %124 = vector.broadcast %cst_7 : f32 to vector<1x512xf32>
    %125 = arith.maximumf %123, %124 : vector<1x512xf32>
    %c34 = arith.constant 34 : index
    %126 = memref.load %arg1[%c34] : memref<43xf32, #tpu.memory_space<smem>>
    %127 = vector.broadcast %126 : f32 to vector<1x512xf32>
    %128 = arith.mulf %125, %127 : vector<1x512xf32>
    %129 = arith.addf %109, %128 : vector<1x512xf32>
    %c35 = arith.constant 35 : index
    %130 = memref.load %arg1[%c35] : memref<43xf32, #tpu.memory_space<smem>>
    %131 = vector.broadcast %130 : f32 to vector<1x512xf32>
    %132 = arith.mulf %125, %131 : vector<1x512xf32>
    %133 = arith.addf %113, %132 : vector<1x512xf32>
    %c36 = arith.constant 36 : index
    %134 = memref.load %arg1[%c36] : memref<43xf32, #tpu.memory_space<smem>>
    %135 = vector.broadcast %134 : f32 to vector<1x512xf32>
    %136 = arith.mulf %125, %135 : vector<1x512xf32>
    %137 = arith.addf %117, %136 : vector<1x512xf32>
    %c7 = arith.constant 7 : index
    %138 = memref.load %arg1[%c7] : memref<43xf32, #tpu.memory_space<smem>>
    %c15 = arith.constant 15 : index
    %139 = memref.load %arg1[%c15] : memref<43xf32, #tpu.memory_space<smem>>
    %140 = vector.broadcast %138 : f32 to vector<1x512xf32>
    %141 = arith.mulf %0, %140 : vector<1x512xf32>
    %142 = vector.broadcast %139 : f32 to vector<1x512xf32>
    %143 = arith.addf %141, %142 : vector<1x512xf32>
    %cst_8 = arith.constant 0.000000e+00 : f32
    %144 = vector.broadcast %cst_8 : f32 to vector<1x512xf32>
    %145 = arith.maximumf %143, %144 : vector<1x512xf32>
    %c37 = arith.constant 37 : index
    %146 = memref.load %arg1[%c37] : memref<43xf32, #tpu.memory_space<smem>>
    %147 = vector.broadcast %146 : f32 to vector<1x512xf32>
    %148 = arith.mulf %145, %147 : vector<1x512xf32>
    %149 = arith.addf %129, %148 : vector<1x512xf32>
    %c38 = arith.constant 38 : index
    %150 = memref.load %arg1[%c38] : memref<43xf32, #tpu.memory_space<smem>>
    %151 = vector.broadcast %150 : f32 to vector<1x512xf32>
    %152 = arith.mulf %145, %151 : vector<1x512xf32>
    %153 = arith.addf %133, %152 : vector<1x512xf32>
    %c39 = arith.constant 39 : index
    %154 = memref.load %arg1[%c39] : memref<43xf32, #tpu.memory_space<smem>>
    %155 = vector.broadcast %154 : f32 to vector<1x512xf32>
    %156 = arith.mulf %145, %155 : vector<1x512xf32>
    %157 = arith.addf %137, %156 : vector<1x512xf32>
    %c40 = arith.constant 40 : index
    %158 = memref.load %arg1[%c40] : memref<43xf32, #tpu.memory_space<smem>>
    %159 = vector.broadcast %158 : f32 to vector<1x512xf32>
    %160 = arith.addf %149, %159 : vector<1x512xf32>
    %c41 = arith.constant 41 : index
    %161 = memref.load %arg1[%c41] : memref<43xf32, #tpu.memory_space<smem>>
    %162 = vector.broadcast %161 : f32 to vector<1x512xf32>
    %163 = arith.addf %153, %162 : vector<1x512xf32>
    %c42 = arith.constant 42 : index
    %164 = memref.load %arg1[%c42] : memref<43xf32, #tpu.memory_space<smem>>
    %165 = vector.broadcast %164 : f32 to vector<1x512xf32>
    %166 = arith.addf %157, %165 : vector<1x512xf32>
    %167 = tpu.concatenate %160, %163, %166 in 0 : vector<1x512xf32>, vector<1x512xf32>, vector<1x512xf32> -> vector<3x512xf32>
    %c0_9 = arith.constant 0 : index
    %c0_10 = arith.constant 0 : index
    %168 = vector.load %arg3[%c0_9, %c0_10] : memref<3x512xf32, #tpu.memory_space<vmem>>, vector<3x512xf32>
    tpu.vector_store %arg3[%c0_9, %c0_10], %167 {strides = array<i32>} : memref<3x512xf32, #tpu.memory_space<vmem>>, vector<3x512xf32>,
    return
  }
  func.func @transform_0(%arg0: i32) -> i32 {
    %c0_i32 = arith.constant 0 : i32
    %c0_i32_0 = arith.constant 0 : i32
    return %c0_i32 : i32
  }
  func.func @transform_1(%arg0: i32) -> (i32, i32) {
    %c0_i32 = arith.constant 0 : i32
    %c0_i32_0 = arith.constant 0 : i32
    return %c0_i32, %arg0 : i32, i32
  }
  func.func @transform_2(%arg0: i32) -> (i32, i32) {
    %c0_i32 = arith.constant 0 : i32
    %c0_i32_0 = arith.constant 0 : i32
    return %c0_i32, %arg0 : i32, i32
  }
}

</mosaic_0001>

<bundles_post_ra>
// kernel: tpu_custom_call.1
= control target key start
LH: loop header
LB: loop body
LE: loop exit
PB: predicated region body
PF: predicated region fallthrough
CT: control target
= control target key end

     0   :  { %7 = vsyncpa [#allocation5], 0  ;;  %s588_s0 = inlined_call_operand.hbm [shape: f32[43], index: 0, kind: input, shape index: {}]   ;;  %s589_s1 = inlined_call_operand.hbm [shape: f32[1,512], index: 1, kind: input, shape index: {}]   ;;  %s590_s2 = inlined_call_operand.hbm [shape: f32[3,512], index: 2, kind: output, shape index: {}]  }
   0x1   :  { %8 = vsyncpa [#allocation3], 0 }
   0x2   :  { %9 = vsyncpa [#allocation4], 0  ;;  %s338_s11 = scalar_lea.hbm %s588_s0, 16 }
   0x3   :  { %p339_p0 = scmp.ne.s32.totalorder %s588_s0, %s338_s11  ;;  %p342_p1 = scmp.lt.u32.totalorder %s338_s11, %s588_s0 }
   0x5   :  { %p344_p2 = pnand %p342_p1, %p339_p0 }
   0x7   :  { %347 = shalt.err (!%p344_p2)
}
   0x8   :  { %s398_s16 = smov [#allocation2]   ;;  %s399_s19 = smov [#allocation6]  }
   0x9   :  { %17 = dma.hbm_to_smem %s588_s0, 16, %s398_s16, [#allocation5]  }
   0xa   :  { %s24_s20 = sshll.u32 %s399_s19, 4  ;;  %s348_s23 = scalar_lea.hbm %s589_s1, 64  ;;  %s25_s20 = int_to_ptr.vmem [resolvable:$true] %s24_s20 }
   0xb   :  { %p349_p3 = scmp.ne.s32.totalorder %s589_s1, %s348_s23  ;;  %p352_p4 = scmp.lt.u32.totalorder %s348_s23, %s589_s1 }
   0xd   :  { %p354_p5 = pnand %p352_p4, %p349_p3 }
   0xf   :  { %357 = shalt.err (!%p354_p5)
}
  0x10   :  { %s358_s28 = scalar_lea.vmem %s25_s20, 64  ;;  %p363_p7 = scmp.lt.s32.totalorder %s25_s20, %s25_s20 }
  0x11   :  { %p359_p6 = scmp.ne.s32.totalorder %s25_s20, %s358_s28  ;;  %p364_p8 = scmp.lt.s32.totalorder %s358_s28, %s358_s28 }
  0x13   :  { %p365_p9 = por %p364_p8, %p363_p7 }
  0x15   :  { %p366_p10 = pnand %p365_p9, %p359_p6 }
  0x17   :  { %369 = shalt.err (!%p366_p10)
}
  0x18   :  { %27 = dma.hbm_to_vmem [thread:$0]  %s589_s1, 64, %s25_s20, [#allocation3]  }
  0x19   :  { %392 = dma.done.wait [#allocation5], 16  }
  0x1a   :  { %393 = vsyncadd [#allocation5], 4294967280 }
  0x1b   :  { %394 = dma.done.wait [#allocation3], 64  }
  0x1c   :  { %395 = vsyncadd [#allocation3], 4294967232 }
  0x1d   :  { %34 = sfence }
  0x1e   :  { %s36_s30 = sld [smem:[#allocation2]]  ;;  %s442_s5 = sld [smem:[#allocation2 + $0x11]]  ;;  %v448_v0 = vld [vmem:[#allocation6] sm:$0xf]  ;;  %v195_v5 = vlaneseq  ;;  %vm257_vm0 = vcmask 1040384   ;;  %vm262_vm1 = vcmask 1041408  }
  0x1f   :  { %s293_s3 = sld [smem:[#allocation2 + $0x8]]  ;;  %s444_s6 = sld [smem:[#allocation2 + $0x12]] }
  0x20   :  { %s440_s4 = sld [smem:[#allocation2 + $0x10]]  ;;  %s297_s7 = sld [smem:[#allocation2 + $0x1]] }
  0x21   :  { %s298_s8 = sld [smem:[#allocation2 + $0x9]]  ;;  %s446_s9 = sld [smem:[#allocation2 + $0x13]] }
  0x22   :  { %s450_s1 = sld [smem:[#allocation2 + $0x14]]  ;;  %s452_s10 = sld [smem:[#allocation2 + $0x15]] }
  0x23   :  { %s454_s11 = sld [smem:[#allocation2 + $0x2]]  ;;  %s458_s13 = sld [smem:[#allocation2 + $0x16]] }
  0x24   :  { %s456_s12 = sld [smem:[#allocation2 + $0xa]]  ;;  %v38_v1 = vstv %s36_s30  ;;  %s460_s14 = sld [smem:[#allocation2 + $0x17]]  ;;  %v47_v10 = vstv %s442_s5 }
  0x25   :  { %v40_v2 = vstv %s293_s3  ;;  %v39_v3 = vmul.f32 %v38_v1, %v448_v0  ;;  %s463_s15 = sld [smem:[#allocation2 + $0x18]]  ;;  %s465_s16 = sld [smem:[#allocation2 + $0x3]]  ;;  %v50_v11 = vstv %s444_s6 }
  0x26   :  { %v54_v4 = vstv %s297_s7  ;;  %s467_s17 = sld [smem:[#allocation2 + $0xb]]  ;;  %s469_s18 = sld [smem:[#allocation2 + $0x19]]  ;;  %v44_v7 = vstv %s440_s4 }
  0x27   :  { %v41_v6 = vadd.f32 %v40_v2, %v39_v3  ;;  %v55_v8 = vmul.f32 %v54_v4, %v448_v0  ;;  %v56_v9 = vstv %s298_s8  ;;  %s473_s19 = sld [smem:[#allocation2 + $0x1a]]  ;;  %s475_s20 = sld [smem:[#allocation2 + $0x1b]]  ;;  %v60_v12 = vstv %s446_s9 }
  0x28   :  { %v64_v13 = vstv %s450_s1  ;;  %s481_s21 = sld [smem:[#allocation2 + $0x4]]  ;;  %v68_v18 = vstv %s452_s10  ;;  %s493_s24 = sld [smem:[#allocation2 + $0x1d]] }
  0x29   :  { %v42_v14 = vmax.f32 %v41_v6, 0.0  ;;  %v57_v15 = vadd.f32 %v56_v9, %v55_v8  ;;  %v73_v16 = vstv %s454_s11  ;;  %s485_s22 = sld [smem:[#allocation2 + $0xc]]  ;;  %v79_v20 = vstv %s458_s13  ;;  %s495_s25 = sld [smem:[#allocation2 + $0x1e]] }
  0x2a   :  { %v75_v17 = vstv %s456_s12  ;;  %s487_s23 = sld [smem:[#allocation2 + $0x1c]]  ;;  %v74_v19 = vmul.f32 %v73_v16, %v448_v0  ;;  %v83_v21 = vstv %s460_s14  ;;  %s497_s26 = sld [smem:[#allocation2 + $0x5]] }
  0x2b   :  { %v45_v22 = vmul.f32 %v44_v7, %v42_v14  ;;  %v48_v23 = vmul.f32 %v47_v10, %v42_v14  ;;  %v51_v24 = vmul.f32 %v50_v11, %v42_v14  ;;  %v58_v25 = vmax.f32 %v57_v15, 0.0  ;;  %s502_s27 = sld [smem:[#allocation2 + $0xd]]  ;;  %s504_s28 = sld [smem:[#allocation2 + $0x1f]] }
  0x2c   :  { %v76_v26 = vadd.f32 %v75_v17, %v74_v19  ;;  %v87_v27 = vstv %s463_s15  ;;  %v92_v28 = vstv %s465_s16  ;;  %v94_v29 = vstv %s467_s17  ;;  %s507_s0 = sld [smem:[#allocation2 + $0x20]]  ;;  %s512_s29 = sld [smem:[#allocation2 + $0x21]] }
  0x2d   :  { %v61_v30 = vmul.f32 %v60_v12, %v58_v25  ;;  %v65_v31 = vmul.f32 %v64_v13, %v58_v25  ;;  %v69_v32 = vmul.f32 %v68_v18, %v58_v25  ;;  %v93_v33 = vmul.f32 %v92_v28, %v448_v0  ;;  %s514_s30 = sld [smem:[#allocation2 + $0x6]]  ;;  %s519_s4 = sld [smem:[#allocation2 + $0x22]] }
  0x2e   :  { %v77_v34 = vmax.f32 %v76_v26, 0.0  ;;  %v98_v35 = vstv %s469_s18  ;;  %v102_v36 = vstv %s473_s19  ;;  %v106_v37 = vstv %s475_s20  ;;  %s516_s3 = sld [smem:[#allocation2 + $0xe]]  ;;  %s521_s5 = sld [smem:[#allocation2 + $0x23]] }
  0x2f   :  { %v62_v38 = vadd.f32 %v61_v30, %v45_v22  ;;  %v66_v39 = vadd.f32 %v65_v31, %v48_v23  ;;  %v70_v40 = vadd.f32 %v69_v32, %v51_v24  ;;  %v95_v41 = vadd.f32 %v94_v29, %v93_v33  ;;  %s526_s6 = sld [smem:[#allocation2 + $0x24]]  ;;  %s529_s7 = sld [smem:[#allocation2 + $0x7]] }
  0x30   :  { %v80_v42 = vmul.f32 %v79_v20, %v77_v34  ;;  %v84_v43 = vmul.f32 %v83_v21, %v77_v34  ;;  %v88_v44 = vmul.f32 %v87_v27, %v77_v34  ;;  %v111_v45 = vstv %s481_s21  ;;  %s531_s8 = sld [smem:[#allocation2 + $0xf]]  ;;  %s533_s9 = sld [smem:[#allocation2 + $0x25]] }
  0x31   :  { %v96_v46 = vmax.f32 %v95_v41, 0.0  ;;  %v112_v47 = vmul.f32 %v111_v45, %v448_v0  ;;  %v113_v48 = vstv %s485_s22  ;;  %v117_v49 = vstv %s487_s23  ;;  %s539_s1 = sld [smem:[#allocation2 + $0x26]]  ;;  %s545_s10 = sld [smem:[#allocation2 + $0x27]] }
  0x32   :  { %v81_v50 = vadd.f32 %v80_v42, %v62_v38  ;;  %v85_v51 = vadd.f32 %v84_v43, %v66_v39  ;;  %v89_v52 = vadd.f32 %v88_v44, %v70_v40  ;;  %v121_v53 = vstv %s493_s24  ;;  %s551_s11 = sld [smem:[#allocation2 + $0x28]]  ;;  %s556_s12 = sld [smem:[#allocation2 + $0x29]] }
  0x33   :  { %v99_v54 = vmul.f32 %v98_v35, %v96_v46  ;;  %v103_v55 = vmul.f32 %v102_v36, %v96_v46  ;;  %v107_v56 = vmul.f32 %v106_v37, %v96_v46  ;;  %v114_v57 = vadd.f32 %v113_v48, %v112_v47  ;;  %s558_s13 = sld [smem:[#allocation2 + $0x2a]]  ;;  %s400_s14 = smov [#allocation7]  }
  0x34   :  { %v125_v58 = vstv %s495_s25  ;;  %v130_v59 = vstv %s497_s26  ;;  %v132_v60 = vstv %s502_s27  ;;  %v136_v61 = vstv %s504_s28  ;;  %s283_s15 = sshll.u32 %s400_s14, 4  ;;  %s284_s15 = int_to_ptr.vmem [resolvable:$true] %s283_s15 }
  0x35   :  { %v100_v62 = vadd.f32 %v99_v54, %v81_v50  ;;  %v104_v63 = vadd.f32 %v103_v55, %v85_v51  ;;  %v108_v1 = vadd.f32 %v107_v56, %v89_v52  ;;  %v115_v2 = vmax.f32 %v114_v57, 0.0  ;;  %s370_s16 = scalar_lea.vmem %s284_s15, 256  ;;  %p375_p12 = scmp.lt.s32.totalorder %s284_s15, %s284_s15 }
  0x36   :  { %v131_v3 = vmul.f32 %v130_v59, %v448_v0  ;;  %v140_v4 = vstv %s507_s0  ;;  %v144_v6 = vstv %s512_s29  ;;  %v149_v7 = vstv %s514_s30  ;;  %p371_p11 = scmp.ne.s32.totalorder %s284_s15, %s370_s16  ;;  %p376_p13 = scmp.lt.s32.totalorder %s370_s16, %s370_s16 }
  0x37   :  { %v118_v8 = vmul.f32 %v117_v49, %v115_v2  ;;  %v122_v9 = vmul.f32 %v121_v53, %v115_v2  ;;  %v126_v10 = vmul.f32 %v125_v58, %v115_v2  ;;  %v150_v11 = vmul.f32 %v149_v7, %v448_v0 }
  0x38   :  { %v133_v12 = vadd.f32 %v132_v60, %v131_v3  ;;  %v151_v13 = vstv %s516_s3  ;;  %v155_v14 = vstv %s519_s4  ;;  %v159_v15 = vstv %s521_s5  ;;  %p377_p0 = por %p376_p13, %p375_p12 }
  0x39   :  { %v119_v16 = vadd.f32 %v118_v8, %v100_v62  ;;  %v123_v17 = vadd.f32 %v122_v9, %v104_v63  ;;  %v127_v18 = vadd.f32 %v126_v10, %v108_v1  ;;  %v152_v19 = vadd.f32 %v151_v13, %v150_v11 }
  0x3a   :  { %v134_v20 = vmax.f32 %v133_v12, 0.0  ;;  %v163_v21 = vstv %s526_s6  ;;  %v168_v22 = vstv %s529_s7  ;;  %v170_v23 = vstv %s531_s8  ;;  %p378_p1 = pnand %p377_p0, %p371_p11 }
  0x3b   :  { %v153_v24 = vmax.f32 %v152_v19, 0.0  ;;  %v169_v25 = vmul.f32 %v168_v22, %v448_v0  ;;  %v174_v26 = vstv %s533_s9  ;;  %v196_v27 = vshrl.u32 %v195_v5, 7 }
  0x3c   :  { %v137_v28 = vmul.f32 %v136_v61, %v134_v20  ;;  %v141_v29 = vmul.f32 %v140_v4, %v134_v20  ;;  %v145_v30 = vmul.f32 %v144_v6, %v134_v20  ;;  %v178_v31 = vstv %s539_s1 }
  0x3d   :  { %v156_v32 = vmul.f32 %v155_v14, %v153_v24  ;;  %v160_v33 = vmul.f32 %v159_v15, %v153_v24  ;;  %v164_v34 = vmul.f32 %v163_v21, %v153_v24  ;;  %v171_v35 = vadd.f32 %v170_v23, %v169_v25 }
  0x3e   :  { %v138_v36 = vadd.f32 %v137_v28, %v119_v16  ;;  %v142_v37 = vadd.f32 %v141_v29, %v123_v17  ;;  %v146_v38 = vadd.f32 %v145_v30, %v127_v18  ;;  %v182_v39 = vstv %s545_s10 }
  0x3f   :  { %v172_v40 = vmax.f32 %v171_v35, 0.0  ;;  %v197_v5 = vsub.s32 0, %v196_v27  ;;  %v201_v46 = vsub.s32 1, %v196_v27  ;;  %v186_v47 = vstv %s551_s11 }
  0x40   :  { %v157_v0 = vadd.f32 %v156_v32, %v138_v36  ;;  %v161_v41 = vadd.f32 %v160_v33, %v142_v37  ;;  %v165_v42 = vadd.f32 %v164_v34, %v146_v38  ;;  %v189_v48 = vstv %s556_s12 }
  0x41   :  { %v175_v43 = vmul.f32 %v174_v26, %v172_v40  ;;  %v179_v44 = vmul.f32 %v178_v31, %v172_v40  ;;  %v183_v45 = vmul.f32 %v182_v39, %v172_v40  ;;  %v192_v49 = vstv %s558_s13 }
  0x42   :  { %v205_v50 = vsub.s32 2, %v196_v27  ;;  %v209_v54 = vsub.s32 3, %v196_v27 }
  0x43   :  { %v176_v51 = vadd.f32 %v175_v43, %v157_v0  ;;  %v180_v52 = vadd.f32 %v179_v44, %v161_v41  ;;  %v184_v53 = vadd.f32 %v183_v45, %v165_v42 }
  0x45   :  { %v187_v55 = vadd.f32 %v186_v47, %v176_v51  ;;  %v190_v56 = vadd.f32 %v189_v48, %v180_v52  ;;  %v193_v57 = vadd.f32 %v192_v49, %v184_v53 }
  0x47   :  { %v198_v58 = vrot.slane %v187_v55, %v197_v5  ;;  %v202_v59 = vrot.slane %v187_v55, %v201_v46  ;;  %v206_v60 = vrot.slane %v187_v55, %v205_v50  ;;  %v210_v61 = vrot.slane %v187_v55, %v209_v54 }
  0x48   :  { %v219_v62 = vrot.slane %v190_v56, %v197_v5  ;;  %v223_v63 = vrot.slane %v190_v56, %v201_v46  ;;  %v227_v1 = vrot.slane %v190_v56, %v205_v50  ;;  %v231_v2 = vrot.slane %v190_v56, %v209_v54 }
  0x49   :  { %v240_v3 = vrot.slane %v193_v57, %v197_v5  ;;  %v244_v4 = vrot.slane %v193_v57, %v201_v46  ;;  %v248_v6 = vrot.slane %v193_v57, %v205_v50  ;;  %v252_v7 = vrot.slane %v193_v57, %v209_v54 }
  0x4a   :  { %v258_v8 = vsel %vm257_vm0, %v198_v58, %v219_v62  ;;  %v259_v9 = vsel %vm257_vm0, %v202_v59, %v223_v63  ;;  %v260_v10 = vsel %vm257_vm0, %v206_v60, %v227_v1  ;;  %v261_v11 = vsel %vm257_vm0, %v210_v61, %v231_v2 }
  0x4b   :  { %v263_v12 = vsel %vm262_vm1, %v258_v8, %v240_v3  ;;  %v264_v13 = vsel %vm262_vm1, %v259_v9, %v244_v4  ;;  %v265_v14 = vsel %vm262_vm1, %v260_v10, %v248_v6  ;;  %v266_v15 = vsel %vm262_vm1, %v261_v11, %v252_v7 }
  0x4c   :  { %v271_v16 = vcombine.low %v263_v12, %v264_v13  ;;  %v272_v17 = vcombine.low %v265_v14, %v266_v15 }
  0x4e   :  { %275 = vst [vmem:[#allocation7] sm:$0x77] %v271_v16  ;;  %276 = vst [vmem:[#allocation7 + $0x8] sm:$0x77] %v272_v17 }
  0x4f   :  { %381 = shalt.err (!%p378_p1)
}
  0x50   :  { %s382_s19 = scalar_lea.hbm %s590_s2, 256 }
  0x51   :  { %p383_p2 = scmp.ne.s32.totalorder %s590_s2, %s382_s19  ;;  %p386_p3 = scmp.lt.u32.totalorder %s382_s19, %s590_s2 }
  0x53   :  { %p388_p4 = pnand %p386_p3, %p383_p2 }
  0x55   :  { %391 = shalt.err (!%p388_p4)
}
  0x56   :  { %286 = dma.vmem_to_hbm [thread:$0]  %s284_s15, 256, %s590_s2, [#allocation4]  }
  0x57   :  { %396 = dma.done.wait [#allocation4], 256  }
  0x58   :  { %397 = vsyncadd [#allocation4], 4294967040 }
  0x59   :  { %290 = vsyncpa [#allocation3], 1 }
  0x5a   :  { %291 = vsyncpa [#allocation4], 1 }
  0x5b   :  { %292 = vsyncpa [#allocation5], 1 }

</bundles_post_ra>
